<compile_context>
chip_gen: v6e
topology: v6e:2x2x1
jax: 0.10.0
libtpu: 0.0.40
codegen_flags: <defaults>
</compile_context>

<pallas_src>
import jax
import jax.numpy as jnp
from jax.experimental import pallas as pl
from jax.experimental.pallas import tpu as pltpu

LANE = 128
SUBLANE = 8


def _round_up(x, m):
    return (x + m - 1) // m * m


def _vmem_limit_bytes(default=48 * 1024 * 1024):
    """Generation-aware VMEM budget (~3/4 of physical), v7x-safe fallback."""
    try:
        cap = pltpu.get_tpu_info().vmem_capacity_bytes
        if cap:
            return min(int(cap * 3 // 4), 100 * 1024 * 1024)
    except Exception:
        pass
    return default


def ffn_kernel(x_ref, w1_ref, b1_ref, w2_ref, b2_ref, o_ref):
    x = x_ref[...]
    if x.dtype != jnp.bfloat16:      # trace-time check; no-op when x is bf16
        x = x.astype(jnp.bfloat16)
    # dot #1 on the MXU: bf16 operands, f32 accumulation.
    h = jnp.dot(x, w1_ref[...], preferred_element_type=jnp.float32)
    # bias + tanh in the f32 accumulator (v5e has no bf16 VPU/EUP path).
    h = jnp.tanh(h + b1_ref[...])                              # (tb, n_hid_p) f32
    # dot #2: bf16 operands, f32 accumulation; N = n_output (unpadded).
    out = jnp.dot(h.astype(jnp.bfloat16), w2_ref[...],
                  preferred_element_type=jnp.float32)
    o_ref[...] = (out + b2_ref[...]).astype(o_ref.dtype)       # (tb, n_output)


def prepare_params(w1, b1, w2, b2, mxu_dtype=jnp.bfloat16):
    """One-time param prep: pad the hidden dim to a lane multiple (128) and
    pre-cast weights to bf16 for the MXU.

    Padding is semantics-preserving: padded hidden columns have zero w1 weights
    and zero bias -> tanh(0) = 0 -> multiplied by zero-padded w2 rows -> no
    contribution.  Input and output dims are left unpadded (full-extent blocks).
    """
    n_input, n_hidden = w1.shape
    n_output = w2.shape[1]
    n_hid_p = _round_up(n_hidden, LANE)

    w1_p = jnp.zeros((n_input, n_hid_p), mxu_dtype).at[:, :n_hidden].set(
        w1.astype(mxu_dtype))
    b1_p = jnp.zeros((1, n_hid_p), jnp.float32).at[:, :n_hidden].set(
        b1.reshape(1, -1).astype(jnp.float32))
    w2_p = jnp.zeros((n_hid_p, n_output), mxu_dtype).at[:n_hidden, :].set(
        w2.astype(mxu_dtype))
    b2_p = b2.reshape(1, -1).astype(jnp.float32)
    return (w1_p, b1_p, w2_p, b2_p), (n_input, n_hidden, n_output)


def ffn_forward(x, padded_params, dims, *, batch_tile=512, out_dtype=jnp.float32):
    """x: (B, n_input), f32 or (preferably) bf16; padded_params from prepare_params."""
    w1_p, b1_p, w2_p, b2_p = padded_params
    n_input, n_hidden, n_output = dims
    B = x.shape[0]
    n_hid_p = w1_p.shape[1]

    # Batch tile: multiple of the 8-row sublane tile, clamped for tiny batches.
    tb = min(batch_tile, _round_up(B, SUBLANE))
    tb = _round_up(tb, SUBLANE)
    # v7x: 'parallel' only pays off with >=2 independent grid steps (2 TCs);
    # split mid-sized batches into at least two tiles.
    if pl.cdiv(B, tb) < 2 and B > 2 * LANE:
        tb = _round_up(pl.cdiv(B, 2), SUBLANE)
    grid = (pl.cdiv(B, tb),)

    # Single-buffer the grid-invariant weights once double-buffering them would
    # waste meaningful VMEM (matters on v7x's 64 MiB physical VMEM).  Tiny
    # weights keep the default pipelining path.
    weight_bytes = (w1_p.size * w1_p.dtype.itemsize
                    + w2_p.size * w2_p.dtype.itemsize)
    wkw = {"pipeline_mode": pl.Buffered(1)} if weight_bytes > 4 * 1024 * 1024 else {}
    # TODO(synk): once w1_p/w2_p exceed the VMEM budget, add a hidden-dim grid
    # axis with an f32 VMEM accumulator + pl.when init/finalize (K/N tiling).

    flops = 2 * B * (n_input * n_hid_p + n_hid_p * n_output)
    bytes_accessed = (
        x.size * x.dtype.itemsize
        + w1_p.size * w1_p.dtype.itemsize + b1_p.size * b1_p.dtype.itemsize
        + w2_p.size * w2_p.dtype.itemsize + b2_p.size * b2_p.dtype.itemsize
        + B * n_output * jnp.dtype(out_dtype).itemsize)

    return pl.pallas_call(
        ffn_kernel,
        out_shape=jax.ShapeDtypeStruct((B, n_output), out_dtype),
        grid=grid,
        in_specs=[
            # x: streamed over the batch -> auto double-buffered DMA.
            pl.BlockSpec((tb, n_input), lambda i: (i, 0)),
            # weights / biases: constant index_map -> VMEM-resident across steps.
            pl.BlockSpec((n_input, n_hid_p), lambda i: (0, 0), **wkw),
            pl.BlockSpec((1, n_hid_p), lambda i: (0, 0), **wkw),
            pl.BlockSpec((n_hid_p, n_output), lambda i: (0, 0), **wkw),
            pl.BlockSpec((1, n_output), lambda i: (0, 0), **wkw),
        ],
        # Unpadded output block: last dim == full array dim is legal under the
        # (8,128) rule; stores are masked (vst.msk) but HBM writeback drops 64x
        # vs. a 128-lane padded output and the wrapper slice pass disappears.
        out_specs=pl.BlockSpec((tb, n_output), lambda i: (i, 0)),
        compiler_params=pltpu.CompilerParams(
            dimension_semantics=("parallel",),
            vmem_limit_bytes=_vmem_limit_bytes(),
        ),
        cost_estimate=pl.CostEstimate(
            flops=flops,
            transcendentals=B * n_hid_p,
            bytes_accessed=bytes_accessed),
    )(x, w1_p, b1_p, w2_p, b2_p)


if __name__ == "__main__":
    # Small shapes consistent with the module's forward: n_output=2 (roll, pitch).
    B, n_input, n_hidden, n_output = 8, 16, 32, 2

    key = jax.random.PRNGKey(0)
    kx, k1, k2, k3, k4 = jax.random.split(key, 5)
    lim1 = 1.0 / jnp.sqrt(n_input)
    lim2 = 1.0 / jnp.sqrt(n_hidden)
    x = jax.random.normal(kx, (B, n_input), jnp.float32)
    w1 = jax.random.uniform(k1, (n_input, n_hidden), jnp.float32, -lim1, lim1)
    b1 = jax.random.uniform(k2, (n_hidden,), jnp.float32, -lim1, lim1)
    w2 = jax.random.uniform(k3, (n_hidden, n_output), jnp.float32, -lim2, lim2)
    b2 = jax.random.uniform(k4, (n_output,), jnp.float32, -lim2, lim2)

    padded_params, dims = prepare_params(w1, b1, w2, b2)

    # Stream x in bf16 (halves x DMA); ideally the upstream producer emits bf16
    # directly so this cast fuses away. The kernel also accepts f32 x.
    out = ffn_forward(x.astype(jnp.bfloat16), padded_params, dims)
    out = jax.block_until_ready(out)

    # Pure-JAX f32 reference (kernel uses bf16 MXU operands -> relaxed tolerance).
    ref = jnp.tanh(x @ w1 + b1) @ w2 + b2
    assert out.shape == (B, n_output)
    assert jnp.allclose(out, ref, atol=3e-2, rtol=2e-2)

    print("KERNEL_OK")
</pallas_src>

<mosaic_0001>
module attributes {stable_mosaic.version = 11 : i64} {
  func.func @ffn_kernel(%arg0: i32, %arg1: memref<8x16xbf16, #tpu.memory_space<vmem>>, %arg2: memref<16x128xbf16, #tpu.memory_space<vmem>>, %arg3: memref<1x128xf32, #tpu.memory_space<vmem>>, %arg4: memref<128x2xbf16, #tpu.memory_space<vmem>>, %arg5: memref<1x2xf32, #tpu.memory_space<vmem>>, %arg6: memref<8x2xf32, #tpu.memory_space<vmem>>) attributes {dimension_semantics = [#tpu.dimension_semantics<parallel>], iteration_bounds = array<i64: 1>, scalar_prefetch = 0 : i64, scratch_operands = 0 : i64, tpu.core_type = #tpu.core_type<tc>, window_params = [{transform_indices = @transform_0, window_bounds = array<i64: 8, 16>}, {pipeline_mode = #tpu.pipeline_mode<synchronous>, transform_indices = @transform_1, window_bounds = array<i64: 16, 128>}, {pipeline_mode = #tpu.pipeline_mode<synchronous>, transform_indices = @transform_2, window_bounds = array<i64: 1, 128>}, {pipeline_mode = #tpu.pipeline_mode<synchronous>, transform_indices = @transform_3, window_bounds = array<i64: 128, 2>}, {pipeline_mode = #tpu.pipeline_mode<synchronous>, transform_indices = @transform_4, window_bounds = array<i64: 1, 2>}, {transform_indices = @transform_5, window_bounds = array<i64: 8, 2>}]} {
    %c0 = arith.constant 0 : index
    %c0_0 = arith.constant 0 : index
    %0 = vector.load %arg1[%c0, %c0_0] : memref<8x16xbf16, #tpu.memory_space<vmem>>, vector<8x16xbf16>
    %c0_1 = arith.constant 0 : index
    %c0_2 = arith.constant 0 : index
    %1 = vector.load %arg2[%c0_1, %c0_2] : memref<16x128xbf16, #tpu.memory_space<vmem>>, vector<16x128xbf16>
    %cst = arith.constant dense<0.000000e+00> : vector<8x128xf32>
    %2 = tpu.matmul %0, %1, %cst {dimension_numbers = #tpu.dot_dimension_numbers<[1], [0], [0], [1], [0, 0, 1, 1], [], []>} : vector<8x16xbf16>, vector<16x128xbf16>, vector<8x128xf32> -> vector<8x128xf32>
    %c0_3 = arith.constant 0 : index
    %c0_4 = arith.constant 0 : index
    %3 = vector.load %arg3[%c0_3, %c0_4] : memref<1x128xf32, #tpu.memory_space<vmem>>, vector<1x128xf32>
    %4 = vector.broadcast %3 : vector<1x128xf32> to vector<8x128xf32>
    %5 = arith.addf %2, %4 : vector<8x128xf32>
    %6 = math.tanh %5 : vector<8x128xf32>
    %7 = arith.truncf %6 : vector<8x128xf32> to vector<8x128xbf16>
    %c0_5 = arith.constant 0 : index
    %c0_6 = arith.constant 0 : index
    %8 = vector.load %arg4[%c0_5, %c0_6] : memref<128x2xbf16, #tpu.memory_space<vmem>>, vector<128x2xbf16>
    %cst_7 = arith.constant dense<0.000000e+00> : vector<8x2xf32>
    %9 = tpu.matmul %7, %8, %cst_7 {dimension_numbers = #tpu.dot_dimension_numbers<[1], [0], [0], [1], [0, 0, 1, 1], [], []>} : vector<8x128xbf16>, vector<128x2xbf16>, vector<8x2xf32> -> vector<8x2xf32>
    %c0_8 = arith.constant 0 : index
    %c0_9 = arith.constant 0 : index
    %10 = vector.load %arg5[%c0_8, %c0_9] : memref<1x2xf32, #tpu.memory_space<vmem>>, vector<1x2xf32>
    %11 = vector.broadcast %10 : vector<1x2xf32> to vector<8x2xf32>
    %12 = arith.addf %9, %11 : vector<8x2xf32>
    %c0_10 = arith.constant 0 : index
    %c0_11 = arith.constant 0 : index
    %13 = vector.load %arg6[%c0_10, %c0_11] : memref<8x2xf32, #tpu.memory_space<vmem>>, vector<8x2xf32>
    tpu.vector_store %arg6[%c0_10, %c0_11], %12 {strides = array<i32>} : memref<8x2xf32, #tpu.memory_space<vmem>>, vector<8x2xf32>,
    return
  }
  func.func @transform_0(%arg0: i32) -> (i32, i32) {
    %c0_i32 = arith.constant 0 : i32
    %c0_i32_0 = arith.constant 0 : i32
    return %arg0, %c0_i32 : i32, i32
  }
  func.func @transform_1(%arg0: i32) -> (i32, i32) {
    %c0_i32 = arith.constant 0 : i32
    %c0_i32_0 = arith.constant 0 : i32
    %c0_i32_1 = arith.constant 0 : i32
    return %c0_i32, %c0_i32_0 : i32, i32
  }
  func.func @transform_2(%arg0: i32) -> (i32, i32) {
    %c0_i32 = arith.constant 0 : i32
    %c0_i32_0 = arith.constant 0 : i32
    %c0_i32_1 = arith.constant 0 : i32
    return %c0_i32, %c0_i32_0 : i32, i32
  }
  func.func @transform_3(%arg0: i32) -> (i32, i32) {
    %c0_i32 = arith.constant 0 : i32
    %c0_i32_0 = arith.constant 0 : i32
    %c0_i32_1 = arith.constant 0 : i32
    return %c0_i32, %c0_i32_0 : i32, i32
  }
  func.func @transform_4(%arg0: i32) -> (i32, i32) {
    %c0_i32 = arith.constant 0 : i32
    %c0_i32_0 = arith.constant 0 : i32
    %c0_i32_1 = arith.constant 0 : i32
    return %c0_i32, %c0_i32_0 : i32, i32
  }
  func.func @transform_5(%arg0: i32) -> (i32, i32) {
    %c0_i32 = arith.constant 0 : i32
    %c0_i32_0 = arith.constant 0 : i32
    return %arg0, %c0_i32 : i32, i32
  }
}

</mosaic_0001>

<bundles_post_ra>
// kernel: tpu_custom_call.1
= control target key start
LH: loop header
LB: loop body
LE: loop exit
PB: predicated region body
PF: predicated region fallthrough
CT: control target
= control target key end

     0   :  { %v262_v0 = vmov 0.0   ;;  %vm263_vm0 = vmmov 0   ;;  %vm37_vm1 = vcmask 130048   ;;  %vm194_vm2 = vcmask 15360   ;;  %s333_s1 = inlined_call_operand.vmem [shape: bf16[16,128], index: 1, kind: input, shape index: {}]   ;;  %s334_s0 = inlined_call_operand.vmem [shape: bf16[8,16], index: 0, kind: input, shape index: {}]   ;;  %s335_s3 = inlined_call_operand.vmem [shape: bf16[128,2], index: 3, kind: input, shape index: {}]   ;;  %s336_s2 = inlined_call_operand.vmem [shape: f32[1,128], index: 2, kind: input, shape index: {}]   ;;  %s337_s4 = inlined_call_operand.vmem [shape: f32[1,2], index: 4, kind: input, shape index: {}]   ;;  %s338_s5 = inlined_call_operand.vmem [shape: f32[8,2], index: 5, kind: output, shape index: {}]  }
   0x1   :  { %223 = vmatprep.subr.bf16.mxu0 %v262_v0  ;;  %v251_v1 = vld [vmem:[%s333_s1] sm:$0xff]   ;;  %225 = vmatprep.mubr.msk.bf16.mxu0 %vm263_vm0, %v262_v0  ;;  %v252_v3 = vld [vmem:[%s335_s3 + $0x38] sm:$0xff]   ;;  %v253_v4 = vld [vmem:[%s335_s3 + $0x30] sm:$0xff]  }
   0x2   :  { %v21_v2 = vld [vmem:[%s334_s0] sm:$0xf]  ;;  %229 = vmatprep.subr.bf16.mxu1 %v262_v0  ;;  %245 = vmatprep.mubr.msk.bf16.mxu1 %vm263_vm0, %v262_v0  ;;  %v254_v5 = vld [vmem:[%s335_s3 + $0x28] sm:$0xff]   ;;  %v256_v7 = vld [vmem:[%s335_s3 + $0x18] sm:$0xff]  }
   0x3   :  { %224 = vmatpush3.bf16.msra.mxu0 %v251_v1  ;;  %230 = vmatpush3.bf16.msra.mxu1 %v252_v3  ;;  %v255_v6 = vld [vmem:[%s335_s3 + $0x20] sm:$0xff]   ;;  %v257_v8 = vld [vmem:[%s335_s3 + $0x10] sm:$0xff]   ;;  %v258_v9 = vld [vmem:[%s335_s3 + $0x8] sm:$0xff]  }
   0x4   :  { %231 = vmatprep.subr.bf16.mxu1 %v262_v0  ;;  %v259_v10 = vld [vmem:[%s335_s3] sm:$0xff]  }
   0x5   :  { %v200_v11 = vld [vmem:[%s336_s2] ss:$0 sm:$0xff] }
   0x6   :  { %226 = vmatmul.mubr.msk.bf16.vlgmr.msra.gmra.mxu0 %vm37_vm1, %v21_v2  ;;  %v203_v19 = vld [vmem:[%s337_s4] ss:$0 sm:$0xff] }
   0x7   :  { %232 = vmatpush3.bf16.msra.mxu1 %v253_v4 }
   0x8   :  { %233 = vmatprep.subr.bf16.mxu1 %v262_v0 }
   0xb   :  { %234 = vmatpush3.bf16.msra.mxu1 %v254_v5 }
   0xc   :  { %235 = vmatprep.subr.bf16.mxu1 %v262_v0 }
   0xf   :  { %236 = vmatpush3.bf16.msra.mxu1 %v255_v6 }
  0x10   :  { %237 = vmatprep.subr.bf16.mxu1 %v262_v0 }
  0x13   :  { %238 = vmatpush3.bf16.msra.mxu1 %v256_v7 }
  0x14   :  { %239 = vmatprep.subr.bf16.mxu1 %v262_v0 }
  0x17   :  { %240 = vmatpush3.bf16.msra.mxu1 %v257_v8 }
  0x18   :  { %241 = vmatprep.subr.bf16.mxu1 %v262_v0 }
  0x1b   :  { %242 = vmatpush3.bf16.msra.mxu1 %v258_v9 }
  0x1c   :  { %243 = vmatprep.subr.bf16.mxu1 %v262_v0 }
  0x1f   :  { %244 = vmatpush3.bf16.msra.mxu1 %v259_v10 }
  0xc6   :  { %v75_v12 = vpop.f32.mrf.mxu0 }
  0xc7   :  { %v76_v13 = vadd.f32 %v200_v11, %v75_v12 }
  0xc8   :  { %v227_v14 = vpop.f32.mrf.mxu0 }
  0xc9   :  { %260 = vtanh.f32 %v76_v13 }
  0xca   :  { %v78_v15 = vpop.f32.mrf.mxu0 }
  0xcc   :  { %v228_v16 = vpop.f32.mrf.mxu0 }
  0xd6   :  { %v261_v17 = vpop.eup %260 }
  0xd7   :  { %v82_v18 = vpack.c.bf16 %v261_v17, %v261_v17 }
  0xd9   :  { %246 = vmatmul.mubr.bf16.vlgmr.msra.gmra.mxu1 %v82_v18 }
 0x199   :  { %v188_v20 = vpop.f32.mrf.mxu1 }
 0x19a   :  { %v189_v21 = vadd.f32 %v203_v19, %v188_v20 }
 0x19b   :  { %v247_v22 = vpop.f32.mrf.mxu1 }
 0x19c   :  { %195 = vst.msk [vmem:[%s338_s5] sm:$0xff] %vm194_vm2, %v189_v21 }
 0x19d   :  { %v191_v23 = vpop.f32.mrf.mxu1 }
 0x19f   :  { %v248_v24 = vpop.f32.mrf.mxu1 }

</bundles_post_ra>
